<compile_context>
chip_gen: v7x
topology: tpu7x:2x2x1
jax: 0.10.0
libtpu: 0.0.40
codegen_flags: <defaults>
</compile_context>

<pallas_src>
import jax
import jax.numpy as jnp
from jax import lax
from jax.experimental import pallas as pl
from jax.experimental.pallas import tpu as pltpu


# ----------------------------------------------------------------------------
# Fused Pallas kernel: (backbone 1x1 conv + ReLU + patchify + patch projection)
# ----------------------------------------------------------------------------
def _fused_hybrid_embed_kernel(x_ref, w1_ref, b1_ref, w2_ref, b2_ref, o_ref):
    """One grid step: (tr, G*pp*Cin) packed raw patches -> (tr, G*E) embeddings.

    x_ref  : (tr, G*pp*Cin)       raw pixels, packed [group][k][cin]
    w1_ref : (G*pp*Cin, G*pp*Cf)  block-diag backbone 1x1-conv weight (patchify fused)
    b1_ref : (1, G*pp*Cf)         backbone bias, tiled, f32
    w2_ref : (G*pp*Cf, G*E)       block-diag patch-projection weight
    b2_ref : (1, G*E)             projection bias, tiled, f32
    o_ref  : (tr, G*E)            lane-dense output tile (single unmasked store)
    """
    # Backbone 1x1 conv + patchify: one block-diagonal MXU dot.
    feat = jnp.dot(x_ref[...], w1_ref[...], preferred_element_type=jnp.float32)
    # Bias + ReLU once, on the full lane-dense (tr, G*pp*Cf) tensor, in f32.
    feat = jnp.maximum(feat + b1_ref[...], 0.0)
    # Patch-projection conv: second MXU dot with the full K = G*pp*Cf contraction.
    y = jnp.dot(feat.astype(w2_ref.dtype), w2_ref[...],
                preferred_element_type=jnp.float32) + b2_ref[...]
    o_ref[...] = y.astype(o_ref.dtype)


def _choose_row_tile(n_rows, bytes_per_row, *, target_steps=8,
                     vmem_tile_budget=4 << 20):
    """n_rows must be a multiple of 8 (caller pads).

    Pick the largest row tile that (a) is a multiple of 8, (b) divides n_rows,
    (c) keeps per-step VMEM (double-buffered tiles + f32 intermediates) under
    budget, and (d) still yields >= target_steps grid steps so the prefetch
    pipeline reaches steady state and v7x's two TensorCores each get several
    iterations.  At tiny problem sizes the 8-row floor wins (best possible)."""
    assert n_rows % 8 == 0 and n_rows > 0
    vmem_rows = max(8, (vmem_tile_budget // max(bytes_per_row, 1)) // 8 * 8)
    step_rows = max(8, (n_rows // target_steps) // 8 * 8)
    tr = max(8, min(n_rows, vmem_rows, step_rows))
    while n_rows % tr:
        tr -= 8
    return tr


def fused_hybrid_embed(x_rows, w1, b1, w2, b2, *, out_dtype=jnp.float32):
    """x_rows:(R, Kin)  w1:(Kin, N1)  b1:(1, N1)  w2:(N1, Nout)  b2:(1, Nout)
    R must be a multiple of 8.  Returns the lane-dense (R, Nout) output slab."""
    R, Kin = x_rows.shape
    K1, N1 = w1.shape
    N1b, Nout = w2.shape
    assert K1 == Kin and N1b == N1, (K1, Kin, N1b, N1)
    assert R % 8 == 0

    itm = x_rows.dtype.itemsize
    out_itm = jnp.dtype(out_dtype).itemsize
    # Per-row VMEM: double-buffered x/out tiles + f32 feat intermediate (+ its
    # possibly-bf16 MXU copy).
    bytes_per_row = 2 * Kin * itm + N1 * 4 + N1 * itm + 2 * Nout * out_itm
    tr = _choose_row_tile(R, bytes_per_row)
    grid = (R // tr,)

    flops = 2 * R * Kin * N1 + 2 * R * N1 * Nout
    weight_bytes = (w1.size * w1.dtype.itemsize + w2.size * w2.dtype.itemsize
                    + b1.size * b1.dtype.itemsize + b2.size * b2.dtype.itemsize)
    bytes_accessed = (x_rows.size * itm + weight_bytes + R * Nout * out_itm)

    # Explicit scoped-VMEM limit (weights are grid-invariant but still get a
    # pipeline buffer each); generous headroom, capped below v7x's 64 MiB.
    vmem_need = 2 * weight_bytes + tr * bytes_per_row + (1 << 20)
    vmem_limit = int(min(48 << 20, max(32 << 20, 2 * vmem_need)))

    return pl.pallas_call(
        _fused_hybrid_embed_kernel,
        out_shape=jax.ShapeDtypeStruct((R, Nout), out_dtype),
        grid_spec=pltpu.PrefetchScalarGridSpec(
            num_scalar_prefetch=0,
            grid=grid,
            in_specs=[
                pl.BlockSpec((tr, Kin), lambda i: (i, 0)),
                pl.BlockSpec((K1, N1), lambda i: (0, 0)),
                pl.BlockSpec((1, N1), lambda i: (0, 0)),
                pl.BlockSpec((N1, Nout), lambda i: (0, 0)),
                pl.BlockSpec((1, Nout), lambda i: (0, 0)),
            ],
            out_specs=pl.BlockSpec((tr, Nout), lambda i: (i, 0)),
        ),
        compiler_params=pltpu.CompilerParams(
            dimension_semantics=("parallel",),
            vmem_limit_bytes=vmem_limit,
            # TODO(synk): at real HybridEmbed sizes (Cf~1-2k, E=768, G=1) pass
            # the weights in bf16, mark the grid-invariant weight specs
            # pipeline_mode=pl.Buffered(1) and add K-tiling of pp*Cf as an
            # inner "arbitrary" grid axis with an f32 accumulator scratch so
            # the kernel fits v7x's 64 MiB VMEM.
        ),
        cost_estimate=pl.CostEstimate(flops=flops, transcendentals=0,
                                      bytes_accessed=bytes_accessed),
    )(x_rows, w1, b1, w2, b2)


# ----------------------------------------------------------------------------
# HybridEmbed module in JAX/Pallas
# ----------------------------------------------------------------------------
class HybridEmbedPallas:
    """JAX/Pallas port of HybridEmbed with a deterministic 1x1-conv+ReLU backbone."""

    def __init__(self, img_size=16, patch_size=2, in_chans=4, feature_dim=32,
                 embed_dim=32, compute_dtype=jnp.float32, key=None):
        assert key is not None
        self.img_size = (img_size, img_size)
        self.patch_size = (patch_size, patch_size)
        self.in_chans = in_chans
        self.feature_dim = feature_dim
        self.embed_dim = embed_dim
        self.compute_dtype = compute_dtype
        assert img_size % patch_size == 0, "Feature size is not a multiple of patch size."
        # backbone stand-in preserves spatial size -> feature_size == img_size
        self.grid_size = (img_size // patch_size, img_size // patch_size)
        self.num_patches = self.grid_size[0] * self.grid_size[1]
        # lane-dense output grouping: pack 128//E patches per output row
        if embed_dim < 128 and 128 % embed_dim == 0:
            self.out_group = 128 // embed_dim
        else:
            self.out_group = 1

        k0, k1, k2, k3 = jax.random.split(key, 4)
        # synthetic backbone: 1x1 conv (Cf, Cin) + ReLU   (torch weight (Cf, Cin, 1, 1))
        self.bb_w = (0.02 * jax.random.normal(k0, (feature_dim, in_chans))).astype(jnp.float32)
        self.bb_b = (0.01 * jax.random.normal(k1, (feature_dim,))).astype(jnp.float32)
        # proj: Conv2d(feature_dim, embed_dim, kernel=patch, stride=patch), torch (E, Cf, p, p)
        self.proj_w = (0.02 * jax.random.normal(
            k2, (embed_dim, feature_dim, patch_size, patch_size))).astype(jnp.float32)
        self.proj_b = (0.01 * jax.random.normal(k3, (embed_dim,))).astype(jnp.float32)

    def __call__(self, x_nchw, return_feat=False):
        B, Cin, H, W = x_nchw.shape
        assert Cin == self.in_chans
        ph, pw = self.patch_size
        Gh, Gw = H // ph, W // pw              # backbone stand-in preserves spatial dims
        pp = ph * pw
        Cf, E = self.feature_dim, self.embed_dim
        P = B * Gh * Gw
        G = self.out_group if P % self.out_group == 0 else 1
        R = P // G
        cd = self.compute_dtype

        # Patchify permutation on the RAW (Cin-narrow) input; the minor dim is
        # G*pp*Cin (wide), so each grid step loads one dense slab instead of
        # 16 nearly-empty (tr, Cin=4) slices.  Per-patch column order: [k][cin];
        # packed patch index p = r*G + g.
        x_rows = (jnp.transpose(x_nchw, (0, 2, 3, 1))          # (B, H, W, Cin)
                  .reshape(B, Gh, ph, Gw, pw, Cin)
                  .transpose(0, 1, 3, 2, 4, 5)                 # (B, Gh, Gw, ph, pw, Cin)
                  .reshape(P, pp * Cin)
                  .reshape(R, G * pp * Cin)
                  .astype(cd))

        # Pad rows to a multiple of 8 so the kernel always tiles/pipelines.
        R8 = ((R + 7) // 8) * 8
        if R8 != R:
            x_rows = jnp.pad(x_rows, ((0, R8 - R), (0, 0)))

        # Backbone 1x1 conv fused with patchify as a block-diagonal weight:
        #   row  g*pp*Cin + k*Cin + cin  ->  col  g*pp*Cf + k*Cf + cf
        wb_t = self.bb_w.T                                     # (Cin, Cf)
        nblk = G * pp
        w1 = jnp.kron(jnp.eye(nblk, dtype=jnp.float32), wb_t).astype(cd)
        b1 = jnp.tile(self.bb_b, (nblk,)).reshape(1, nblk * Cf).astype(jnp.float32)

        # Patch projection, block-diagonal over the G packed patches per row.
        # torch (E, Cf, ph, pw) -> (ph, pw, Cf, E) -> (pp*Cf, E), rows ordered [k][cf]
        wp = jnp.transpose(self.proj_w, (2, 3, 1, 0)).reshape(pp * Cf, E)
        w2 = jnp.kron(jnp.eye(G, dtype=jnp.float32), wp).astype(cd)
        b2 = jnp.tile(self.proj_b, (G,)).reshape(1, G * E).astype(jnp.float32)

        out_slab = fused_hybrid_embed(x_rows, w1, b1, w2, b2, out_dtype=x_nchw.dtype)
        # (R, G*E) -> (P, E) is a pure row-major reshape (patch p = r*G + g).
        out = out_slab[:R].reshape(P, E).reshape(B, Gh * Gw, E)

        if return_feat:
            # TODO(synk): PyTorch also returns the backbone's intermediate out_list;
            # the synthetic backbone stand-in has none.
            return out, (H // ph, W // pw), []
        return out, (H // ph, W // pw)


# ----------------------------------------------------------------------------
# Plain-JAX reference (lax.conv) for a correctness check
# ----------------------------------------------------------------------------
def _reference(module, x_nchw):
    bb_w4 = module.bb_w[:, :, None, None]
    feat = lax.conv_general_dilated(x_nchw, bb_w4, (1, 1), "VALID",
                                    dimension_numbers=("NCHW", "OIHW", "NCHW"),
                                    precision=lax.Precision.HIGHEST)
    feat = jnp.maximum(feat + module.bb_b[None, :, None, None], 0.0)
    ph, pw = module.patch_size
    y = lax.conv_general_dilated(feat, module.proj_w, (ph, pw), "VALID",
                                 dimension_numbers=("NCHW", "OIHW", "NCHW"),
                                 precision=lax.Precision.HIGHEST)
    y = y + module.proj_b[None, :, None, None]
    B, E, Gh, Gw = y.shape
    y = y.reshape(B, E, Gh * Gw).transpose(0, 2, 1)
    return y, (feat.shape[2] // ph, feat.shape[3] // pw)


if __name__ == "__main__":
    key = jax.random.PRNGKey(0)
    k_param, k_x = jax.random.split(key)

    B, C, H, W = 2, 4, 16, 16
    x = jax.random.normal(k_x, (B, C, H, W), dtype=jnp.float32)

    # f32 compute path (strict check)
    mod = HybridEmbedPallas(img_size=H, patch_size=2, in_chans=C,
                            feature_dim=32, embed_dim=32,
                            compute_dtype=jnp.float32, key=k_param)
    out, grid_hw = mod(x)
    out = jax.block_until_ready(out)

    ref_out, ref_grid = _reference(mod, x)
    assert out.shape == (B, mod.num_patches, mod.embed_dim), out.shape
    assert grid_hw == ref_grid, (grid_hw, ref_grid)
    assert jnp.allclose(out, ref_out, atol=5e-4, rtol=5e-4), "f32 mismatch vs reference"

    # bf16 MXU-input path (f32 accumulate / bias / ReLU) — recommended on v6e/v7x.
    mod_bf16 = HybridEmbedPallas(img_size=H, patch_size=2, in_chans=C,
                                 feature_dim=32, embed_dim=32,
                                 compute_dtype=jnp.bfloat16, key=k_param)
    out_bf16, _ = mod_bf16(x)
    out_bf16 = jax.block_until_ready(out_bf16)
    assert jnp.allclose(out_bf16.astype(jnp.float32), ref_out, atol=2e-2, rtol=1e-1), \
        "bf16 mismatch vs reference"

    print("KERNEL_OK")
</pallas_src>

<mosaic_0001>
module attributes {stable_mosaic.version = 11 : i64} {
  func.func @_fused_hybrid_embed_kernel(%arg0: i32, %arg1: memref<8x64xf32, #tpu.memory_space<vmem>>, %arg2: memref<64x512xf32, #tpu.memory_space<vmem>>, %arg3: memref<1x512xf32, #tpu.memory_space<vmem>>, %arg4: memref<512x128xf32, #tpu.memory_space<vmem>>, %arg5: memref<1x128xf32, #tpu.memory_space<vmem>>, %arg6: memref<8x128xf32, #tpu.memory_space<vmem>>) attributes {dimension_semantics = [#tpu.dimension_semantics<parallel>], iteration_bounds = array<i64: 4>, scalar_prefetch = 0 : i64, scratch_operands = 0 : i64, tpu.core_type = #tpu.core_type<tc>, window_params = [{transform_indices = @transform_0, window_bounds = array<i64: 8, 64>}, {pipeline_mode = #tpu.pipeline_mode<synchronous>, transform_indices = @transform_1, window_bounds = array<i64: 64, 512>}, {pipeline_mode = #tpu.pipeline_mode<synchronous>, transform_indices = @transform_2, window_bounds = array<i64: 1, 512>}, {pipeline_mode = #tpu.pipeline_mode<synchronous>, transform_indices = @transform_3, window_bounds = array<i64: 512, 128>}, {pipeline_mode = #tpu.pipeline_mode<synchronous>, transform_indices = @transform_4, window_bounds = array<i64: 1, 128>}, {transform_indices = @transform_5, window_bounds = array<i64: 8, 128>}]} {
    %c0 = arith.constant 0 : index
    %c0_0 = arith.constant 0 : index
    %0 = vector.load %arg1[%c0, %c0_0] : memref<8x64xf32, #tpu.memory_space<vmem>>, vector<8x64xf32>
    %c0_1 = arith.constant 0 : index
    %c0_2 = arith.constant 0 : index
    %1 = vector.load %arg2[%c0_1, %c0_2] : memref<64x512xf32, #tpu.memory_space<vmem>>, vector<64x512xf32>
    %cst = arith.constant dense<0.000000e+00> : vector<8x512xf32>
    %2 = tpu.matmul %0, %1, %cst {dimension_numbers = #tpu.dot_dimension_numbers<[1], [0], [0], [1], [0, 0, 1, 1], [], []>} : vector<8x64xf32>, vector<64x512xf32>, vector<8x512xf32> -> vector<8x512xf32>
    %c0_3 = arith.constant 0 : index
    %c0_4 = arith.constant 0 : index
    %3 = vector.load %arg3[%c0_3, %c0_4] : memref<1x512xf32, #tpu.memory_space<vmem>>, vector<1x512xf32>
    %4 = vector.broadcast %3 : vector<1x512xf32> to vector<8x512xf32>
    %5 = arith.addf %2, %4 : vector<8x512xf32>
    %cst_5 = arith.constant 0.000000e+00 : f32
    %6 = vector.broadcast %cst_5 : f32 to vector<8x512xf32>
    %7 = arith.maximumf %5, %6 : vector<8x512xf32>
    %c0_6 = arith.constant 0 : index
    %c0_7 = arith.constant 0 : index
    %8 = vector.load %arg4[%c0_6, %c0_7] : memref<512x128xf32, #tpu.memory_space<vmem>>, vector<512x128xf32>
    %cst_8 = arith.constant dense<0.000000e+00> : vector<8x128xf32>
    %9 = tpu.matmul %7, %8, %cst_8 {dimension_numbers = #tpu.dot_dimension_numbers<[1], [0], [0], [1], [0, 0, 1, 1], [], []>} : vector<8x512xf32>, vector<512x128xf32>, vector<8x128xf32> -> vector<8x128xf32>
    %c0_9 = arith.constant 0 : index
    %c0_10 = arith.constant 0 : index
    %10 = vector.load %arg5[%c0_9, %c0_10] : memref<1x128xf32, #tpu.memory_space<vmem>>, vector<1x128xf32>
    %11 = vector.broadcast %10 : vector<1x128xf32> to vector<8x128xf32>
    %12 = arith.addf %9, %11 : vector<8x128xf32>
    %c0_11 = arith.constant 0 : index
    %c0_12 = arith.constant 0 : index
    %13 = vector.load %arg6[%c0_11, %c0_12] : memref<8x128xf32, #tpu.memory_space<vmem>>, vector<8x128xf32>
    tpu.vector_store %arg6[%c0_11, %c0_12], %12 {strides = array<i32>} : memref<8x128xf32, #tpu.memory_space<vmem>>, vector<8x128xf32>,
    return
  }
  func.func @transform_0(%arg0: i32) -> (i32, i32) {
    %c0_i32 = arith.constant 0 : i32
    %c0_i32_0 = arith.constant 0 : i32
    return %arg0, %c0_i32 : i32, i32
  }
  func.func @transform_1(%arg0: i32) -> (i32, i32) {
    %c0_i32 = arith.constant 0 : i32
    %c0_i32_0 = arith.constant 0 : i32
    %c0_i32_1 = arith.constant 0 : i32
    return %c0_i32, %c0_i32_0 : i32, i32
  }
  func.func @transform_2(%arg0: i32) -> (i32, i32) {
    %c0_i32 = arith.constant 0 : i32
    %c0_i32_0 = arith.constant 0 : i32
    %c0_i32_1 = arith.constant 0 : i32
    return %c0_i32, %c0_i32_0 : i32, i32
  }
  func.func @transform_3(%arg0: i32) -> (i32, i32) {
    %c0_i32 = arith.constant 0 : i32
    %c0_i32_0 = arith.constant 0 : i32
    %c0_i32_1 = arith.constant 0 : i32
    return %c0_i32, %c0_i32_0 : i32, i32
  }
  func.func @transform_4(%arg0: i32) -> (i32, i32) {
    %c0_i32 = arith.constant 0 : i32
    %c0_i32_0 = arith.constant 0 : i32
    %c0_i32_1 = arith.constant 0 : i32
    return %c0_i32, %c0_i32_0 : i32, i32
  }
  func.func @transform_5(%arg0: i32) -> (i32, i32) {
    %c0_i32 = arith.constant 0 : i32
    %c0_i32_0 = arith.constant 0 : i32
    return %arg0, %c0_i32 : i32, i32
  }
}

</mosaic_0001>

<bundles_post_ra>
// kernel: tpu_custom_call.1
= control target key start
LH: loop header
LB: loop body
LE: loop exit
PB: predicated region body
PF: predicated region fallthrough
CT: control target
= control target key end

     0   :  { %10 = vsyncpa [#allocation3], 0  ;;  %s1478_s0 = inlined_call_operand.hbm [shape: f32[32,64], index: 0, kind: input, shape index: {}]   ;;  %s1479_s1 = inlined_call_operand.hbm [shape: f32[64,512], index: 1, kind: input, shape index: {}]   ;;  %s1480_s2 = inlined_call_operand.vmem [shape: f32[1,512], index: 2, kind: input, shape index: {}]   ;;  %s1481_s3 = inlined_call_operand.hbm [shape: f32[512,128], index: 3, kind: input, shape index: {}]   ;;  %s1482_s4 = inlined_call_operand.vmem [shape: f32[1,128], index: 4, kind: input, shape index: {}]   ;;  %s1483_s5 = inlined_call_operand.hbm [shape: f32[32,128], index: 5, kind: output, shape index: {}]  }
   0x1   :  { %12 = vsyncpa [#allocation3 + $0x1], 0 }
   0x2   :  { %13 = vsyncpa [#allocation6], 0 }
   0x3   :  { %14 = vsyncpa [#allocation4], 0 }
   0x4   :  { %16 = vsyncpa [#allocation4 + $0x1], 0  ;;  %s1243_s18 = smov 0   ;;  %s1245_s19 = smov 0  }
   0x5   :  { %s1247_s20 = smov 0   ;;  %s1249_s21 = smov 0  }
   0x6 LB: > { %s1264_s22 = sadd.s32 4294967295, %s1202_s21   ;;  %s789_s23 = sadd.s32 4294967294, %s1202_s21   ;;  %s1202_s21 = sphi %s1249_s21, %s1502_s21   ;;  %s1198_s20 = sphi %s1247_s20, %s1501_s20   ;;  %s1194_s19 = sphi %s1245_s19, %s1500_s19   ;;  %s1190_s18 = sphi %s1243_s18, %s1499_s18  }
   0x7   : > { %p42_p0 = scmp.ne.s32.totalorder %s1194_s19, %s1190_s18  ;;  %p1484_p1 = scmp.eq.s32.totalorder %s1264_s22, 0 }
   0x8   : > { %p156_p3 = scmp.eq.s32.totalorder %s789_s23, 3  ;;  %p790_p5 = scmp.ge.s32.totalorder %s1202_s21, 1 }
   0x9   : > { %p1273_p4 = por %p1484_p1, %p42_p0  ;;  %p163_p7 = scmp.lt.s32.totalorder %s1202_s21, 5 }
   0xa   : > { %p1278_p6 = por %p156_p3, %p42_p0  ;;  %s1204_s27 = smov [#allocation5]  }
   0xb   : > { %s1487_s24 = scalar_select %p1273_p4, 1, 0 }
   0xc   : > { %s1488_s25 = scalar_select %p1278_p6, 1, 0 }
   0xd   : > { %p1283_p8 = pnand %p790_p5, %p163_p7  ;;  %s175_s28 = sshll.u32 %s1204_s27, 4  ;;  %s176_s28 = int_to_ptr.vmem [resolvable:$true] %s175_s28 }
   0xe   : > { %s1205_s30 = smov [#allocation7]   ;;  %s1046_s9 = scalar_lea.hbm %s1479_s1, 4096 }
   0xf   : > { %s1489_s26 = scalar_select %p1283_p8, 1, 0 }
  0x10   : > { %p986_p9 = pneg %p1283_p8  ;;  %s191_s6 = sshll.u32 %s1205_s30, 4  ;;  %s1295_s6 = int_to_ptr.vmem [resolvable:$true] %s191_s6 }
  0x11   : > { %p1047_p11 = scmp.ne.s32.totalorder %s1479_s1, %s1046_s9  ;;  %p1053_p3 = scmp.lt.u32.totalorder %s1046_s9, %s1479_s1 }
  0x12   : > { %p1291_p10 = pnand %p986_p9, %p1484_p1 }
  0x14   : > { %p1048_p12 = pneg %p1291_p10 }
  0x16   : > { %p1049_p13 = pnand %p1048_p12, %p1047_p11 }
  0x18   : > { %p1050_p0 = pneg %p1049_p13 }
  0x1a   : > { %p1055_p5 = pnand %p1053_p3, %p1050_p0 }
  0x1c   : > { %1058 = shalt.err (!%p1055_p5)
}
  0x1d   : > { %s1059_s14 = scalar_lea.vmem %s176_s28, 4096  ;;  %p1067_p2 = scmp.lt.s32.totalorder %s176_s28, %s176_s28 }
  0x1e   : > { %p1060_p7 = scmp.ne.s32.totalorder %s176_s28, %s1059_s14  ;;  %p1068_p6 = scmp.lt.s32.totalorder %s1059_s14, %s1059_s14 }
  0x20   : > { %p1062_p9 = pnand %p1060_p7, %p1048_p12  ;;  %p1069_p4 = por %p1068_p6, %p1067_p2 }
  0x22   : > { %p1063_p1 = pneg %p1062_p9 }
  0x24   : > { %p1070_p8 = pnand %p1069_p4, %p1063_p1 }
  0x26   : > { %1073 = shalt.err (!%p1070_p8)
}
  0x27   : > { %s1206_s15 = smov 512   ;;  %s1207_s16 = smov 32  }
  0x28   : > { %989 = dma.hbm_to_vmem [thread:$0]  (!%p1291_p10), %s1479_s1, 4096, %s176_s28, [#allocation6], %s1206_s15, %s1206_s15, %s1207_s16  }
  0x29   : > { %s1074_s7 = scalar_lea.hbm %s1481_s3, 8192 }
  0x2a   : > { %p1075_p11 = scmp.ne.s32.totalorder %s1481_s3, %s1074_s7  ;;  %p1081_p4 = scmp.lt.u32.totalorder %s1074_s7, %s1481_s3 }
  0x2c   : > { %p1077_p1 = pnand %p1075_p11, %p1048_p12 }
  0x2e   : > { %p1078_p2 = pneg %p1077_p1 }
  0x30   : > { %p1083_p6 = pnand %p1081_p4, %p1078_p2 }
  0x32   : > { %1086 = shalt.err (!%p1083_p6)
}
  0x33   : > { %s1087_s28 = scalar_lea.vmem %s1295_s6, 8192  ;;  %p1095_p3 = scmp.lt.s32.totalorder %s1295_s6, %s1295_s6 }
  0x34   : > { %p1088_p8 = scmp.ne.s32.totalorder %s1295_s6, %s1087_s28  ;;  %p1096_p5 = scmp.lt.s32.totalorder %s1087_s28, %s1087_s28 }
  0x36   : > { %p1090_p13 = pnand %p1088_p8, %p1048_p12  ;;  %p1097_p7 = por %p1096_p5, %p1095_p3 }
  0x38   : > { %p1091_p0 = pneg %p1090_p13 }
  0x3a   : > { %p1098_p9 = pnand %p1097_p7, %p1091_p0 }
  0x3c   : > { %1101 = shalt.err (!%p1098_p9)
}
  0x3d   : > { %s1208_s12 = smov 128   ;;  %s1209_s13 = smov 8  }
  0x3e   : > { %992 = dma.hbm_to_vmem [thread:$0]  (!%p1291_p10), %s1481_s3, 8192, %s1295_s6, [#allocation6], %s1208_s12, %s1208_s12, %s1209_s13  }
  0x3f   : > { %s1345_s16 = sadd.s32 1, %s1202_s21   ;;  %s29_s23 = sadd.s32 1, %s1198_s20 }
  0x40   : > { %s26_s17 = ssub.s32 %s1202_s21, %s1345_s16  ;;  %p36_p11 = scmp.ne.s32.totalorder %s1198_s20, %s1194_s19 }
  0x41   : > { %p27_p12 = scmp.eq.s32.totalorder %s26_s17, 0  ;;  %p37_p1 = scmp.eq.s32.totalorder %s1202_s21, 0 }
  0x42   : > { %p1491_p4 = scmp.eq.s32.totalorder %s1264_s22, 3  ;;  %p1003_p8 = scmp.lt.s32.totalorder %s1202_s21, 4 }
  0x43   : > { %s1354_s27 = scalar_select %p27_p12, %s1198_s20, %s29_s23  }
  0x44   : > { %p38_p2 = por %p37_p1, %p36_p11  ;;  %p1358_p6 = por %p1491_p4, %p36_p11 }
  0x45   : > { %s208_s29 = sand.u32 1, %s1198_s20   ;;  %s795_s6 = sshll.u32 %s1202_s21, 7 }
  0x46   : > { %s794_s7 = sshll.u32 %s208_s29, 3  ;;  %s1368_s10 = scalar_lea.hbm %s1478_s0, %s795_s6 }
  0x47   : > { %s212_s11 = scalar_lea.vmem [#allocation2], %s794_s7  ;;  %p1372_p10 = pnand %p1003_p8, %p38_p2 }
  0x48   : > { %s219_s28 = sshll.u32 %s212_s11, 4  ;;  %s209_s13 = scalar_lea.sflag [#allocation3], %s208_s29  ;;  %s1370_s28 = int_to_ptr.vmem [resolvable:$true] %s219_s28 }
  0x49   : > { %s1102_s14 = scalar_lea.hbm %s1368_s10, 128  ;;  %p1104_p0 = pneg %p1372_p10 }
  0x4a   : > { %p1103_p13 = scmp.ne.s32.totalorder %s1368_s10, %s1102_s14  ;;  %s1107_s23 = scalar_lea.hbm %s1478_s0, 512 }
  0x4b   : > { %p1108_p7 = scmp.lt.u32.totalorder %s1368_s10, %s1478_s0  ;;  %p1109_p9 = scmp.lt.u32.totalorder %s1107_s23, %s1102_s14 }
  0x4c   : > { %p1105_p3 = pnand %p1104_p0, %p1103_p13  ;;  %p1111_p11 = scmp.lt.u32.totalorder %s1102_s14, %s1368_s10 }
  0x4d   : > { %p1110_p12 = por %p1109_p9, %p1108_p7 }
  0x4e   : > { %p1106_p5 = pneg %p1105_p3 }
  0x4f   : > { %p1112_p1 = por %p1111_p11, %p1110_p12 }
  0x51   : > { %p1113_p2 = pnand %p1112_p1, %p1106_p5 }
  0x53   : > { %1116 = shalt.err (!%p1113_p2)
}
  0x54   : > { %s1117_s29 = scalar_lea.vmem %s1370_s28, 128  ;;  %s1210_s8 = smov [#allocation2]  }
  0x55   : > { %p1118_p4 = scmp.ne.s32.totalorder %s1370_s28, %s1117_s29  ;;  %s1122_s9 = sshll.u32 %s1210_s8, 4  ;;  %s1123_s9 = int_to_ptr.vmem [resolvable:$false] %s1122_s9 }
  0x56   : > { %s1124_s11 = scalar_lea.vmem %s1123_s9, 256  ;;  %p1125_p3 = scmp.lt.s32.totalorder %s1370_s28, %s1123_s9 }
  0x57   : > { %p1120_p8 = pnand %p1118_p4, %p1104_p0  ;;  %p1126_p7 = scmp.lt.s32.totalorder %s1124_s11, %s1117_s29 }
  0x59   : > { %p1121_p13 = pneg %p1120_p8  ;;  %p1127_p9 = por %p1126_p7, %p1125_p3 }
  0x5b   : > { %p1128_p12 = pnand %p1127_p9, %p1121_p13 }
  0x5d   : > { %1131 = shalt.err (!%p1128_p12)
}
  0x5e   : > { %996 = dma.hbm_to_vmem [thread:$0]  (!%p1372_p10), %s1368_s10, 128, %s1370_s28, %s209_s13  }
  0x5f   : > { %p1494_p5 = scmp.ne.s32.totalorder %s1489_s26, 0 }
  0x60   : > { %s1404_s14 = sand.u32 (!%p1494_p5), 1, %s1194_s19   ;;  %p1495_p0 = scmp.ne.s32.totalorder (!%p1494_p5), %s1487_s24, 0 }
  0x61   : > { %228 = sbr.rel (%p1494_p5) target bundleno = 579 (0x243), region = 40  ;;  %s797_s15 = sshll.u32 (!%p1494_p5), %s1404_s14, 3 }
  0x62   : > { %s231_s17 = scalar_lea.sflag (!%p1494_p5), [#allocation3], %s1404_s14  ;;  %s1410_s23 = scalar_lea.vmem (!%p1494_p5), [#allocation2], %s797_s15 }
  0x68   : > { %1177 = dma.done.wait (%p1495_p0), %s231_s17, 128  }
  0x69   : > { %1179 = vsyncadd (%p1495_p0), %s231_s17, 4294967168  ;;  %p1496_p10 = scmp.eq.s32.totalorder %s1264_s22, 0 }
  0x6b   : > { %1181 = dma.done.wait (%p1496_p10), [#allocation6], 12288   ;;  %p1497_p11 = pmov %p1496_p10 }
  0x6c   : > { %v1211_v0 = vmov 0.0   ;;  %v271_v1 = vld [vmem:[#allocation5 + $0x8] sm:$0xff]  ;;  %v273_v3 = vld [vmem:[#allocation5 + $0x18] sm:$0xff]  ;;  %v270_v6 = vld [vmem:[#allocation5] sm:$0xff]  ;;  %vm324_vm0 = vcmask 523264   ;;  %s805_s12 = sshll.u32 %s1264_s22, 7 }
  0x6d   : > { %1183 = vsyncadd (%p1497_p11), [#allocation6], 4294955008  ;;  %392 = vmatprep.mubr.f32.mxu0 %v1211_v0  ;;  %463 = vmatprep.mubr.f32.mxu1 %v1211_v0  ;;  %v275_v2 = vld [vmem:[#allocation5 + $0x28] sm:$0xff]  ;;  %v277_v5 = vld [vmem:[#allocation5 + $0x38] sm:$0xff]  ;;  %s268_s13 = scalar_lea.vmem [#allocation8], %s797_s15  ;;  %s1435_s8 = scalar_lea.hbm %s1483_s5, %s805_s12 }
  0x6e   : > { %v878_v4 = vpack.c.bf16 %v275_v2, %v271_v1  ;;  %v274_v7 = vld [vmem:[#allocation5 + $0x20] sm:$0xff]  ;;  %v894_v8 = vpack.c.bf16 %v277_v5, %v273_v3  ;;  %v272_v10 = vld [vmem:[#allocation5 + $0x10] sm:$0xff]  ;;  %v279_v12 = vld [vmem:[#allocation5 + $0x48] sm:$0xff]  ;;  %s700_s7 = sshll.u32 %s268_s13, 4  ;;  %s687_s9 = scalar_lea.sflag [#allocation4], %s1404_s14  ;;  %s1437_s7 = int_to_ptr.vmem [resolvable:$true] %s700_s7 }
  0x6f   : > { %v880_v9 = vpack.c.bf16 %v274_v7, %v270_v6  ;;  %v276_v11 = vld [vmem:[#allocation5 + $0x30] sm:$0xff]  ;;  %v283_v14 = vld [vmem:[#allocation5 + $0x68] sm:$0xff]  ;;  %v281_v15 = vld [vmem:[#allocation5 + $0x58] sm:$0xff]  ;;  %s1132_s11 = scalar_lea.vmem %s1437_s7, 128  ;;  %s1212_s22 = smov [#allocation8]  }
  0x70   : > { %879 = vmatprep.subr.bf16.mxu0 %v878_v4  ;;  %v896_v13 = vpack.c.bf16 %v276_v11, %v272_v10  ;;  %v285_v16 = vld [vmem:[#allocation5 + $0x78] sm:$0xff]  ;;  %895 = vmatprep.subr.bf16.mxu1 %v894_v8  ;;  %v882_v17 = vpack.c.bf16 %v283_v14, %v279_v12  ;;  %v278_v19 = vld [vmem:[#allocation5 + $0x40] sm:$0xff]  ;;  %v280_v21 = vld [vmem:[#allocation5 + $0x50] sm:$0xff]  ;;  %p1133_p1 = scmp.ne.s32.totalorder %s1437_s7, %s1132_s11  ;;  %s1136_s15 = sshll.u32 %s1212_s22, 4  ;;  %s1137_s15 = int_to_ptr.vmem [resolvable:$false] %s1136_s15 }
  0x71   : > { %881 = vmatpush1.bf16.msra.mxu0 %v880_v9  ;;  %v898_v18 = vpack.c.bf16 %v285_v16, %v281_v15  ;;  %v282_v20 = vld [vmem:[#allocation5 + $0x60] sm:$0xff]  ;;  %v284_v23 = vld [vmem:[#allocation5 + $0x70] sm:$0xff]  ;;  %v287_v24 = vld [vmem:[#allocation5 + $0x88] sm:$0xff]  ;;  %s1138_s17 = scalar_lea.vmem %s1137_s15, 256  ;;  %p1139_p8 = scmp.lt.s32.totalorder %s1437_s7, %s1137_s15 }
  0x72   : > { %897 = vmatpush1.bf16.msra.mxu1 %v896_v13  ;;  %v884_v22 = vpack.c.bf16 %v282_v20, %v278_v19  ;;  %v291_v25 = vld [vmem:[#allocation5 + $0xa8] sm:$0xff]  ;;  %883 = vmatprep.subr.bf16.mxu0 %v882_v17  ;;  %v900_v26 = vpack.c.bf16 %v284_v23, %v280_v21  ;;  %v289_v28 = vld [vmem:[#allocation5 + $0x98] sm:$0xff]  ;;  %v286_v30 = vld [vmem:[#allocation5 + $0x80] sm:$0xff]  ;;  %p1134_p2 = pnand %p1133_p1, %p1358_p6  ;;  %p1140_p13 = scmp.lt.s32.totalorder %s1138_s17, %s1132_s11 }
  0x73   : > { %899 = vmatprep.subr.bf16.mxu1 %v898_v18  ;;  %v886_v27 = vpack.c.bf16 %v291_v25, %v287_v24  ;;  %v293_v29 = vld [vmem:[#allocation5 + $0xb8] sm:$0xff]  ;;  %v290_v32 = vld [vmem:[#allocation5 + $0xa0] sm:$0xff]  ;;  %v288_v33 = vld [vmem:[#allocation5 + $0x90] sm:$0xff] }
  0x74   : > { %v902_v31 = vpack.c.bf16 %v293_v29, %v289_v28  ;;  %v292_v34 = vld [vmem:[#allocation5 + $0xb0] sm:$0xff]  ;;  %v888_v35 = vpack.c.bf16 %v290_v32, %v286_v30  ;;  %v295_v36 = vld [vmem:[#allocation5 + $0xc8] sm:$0xff]  ;;  %v297_v38 = vld [vmem:[#allocation5 + $0xd8] sm:$0xff]  ;;  %p1135_p4 = pneg %p1134_p2  ;;  %p1141_p3 = por %p1140_p13, %p1139_p8 }
  0x75   : > { %885 = vmatpush1.bf16.msra.mxu0 %v884_v22  ;;  %v299_v37 = vld [vmem:[#allocation5 + $0xe8] sm:$0xff]  ;;  %v904_v39 = vpack.c.bf16 %v292_v34, %v288_v33  ;;  %v301_v41 = vld [vmem:[#allocation5 + $0xf8] sm:$0xff]  ;;  %v294_v42 = vld [vmem:[#allocation5 + $0xc0] sm:$0xff] }
  0x76   : > { %901 = vmatpush1.bf16.msra.mxu1 %v900_v26  ;;  %887 = vmatprep.subr.bf16.mxu0 %v886_v27  ;;  %v890_v40 = vpack.c.bf16 %v299_v37, %v295_v36  ;;  %v298_v43 = vld [vmem:[#allocation5 + $0xe0] sm:$0xff]  ;;  %v906_v44 = vpack.c.bf16 %v301_v41, %v297_v38  ;;  %v296_v45 = vld [vmem:[#allocation5 + $0xd0] sm:$0xff]  ;;  %v491_v48 = vld [vmem:[#allocation7 + $0x88] sm:$0xff]  ;;  %p1142_p7 = pnand %p1141_p3, %p1135_p4 }
  0x77   : > { %903 = vmatprep.subr.bf16.mxu1 %v902_v31  ;;  %v300_v46 = vld [vmem:[#allocation5 + $0xf0] sm:$0xff]  ;;  %v490_v47 = vld [vmem:[#allocation7 + $0x80] sm:$0xff]  ;;  %v892_v50 = vpack.c.bf16 %v298_v43, %v294_v42  ;;  %v523_v51 = vld [vmem:[#allocation7 + $0x188] sm:$0xff] }
  0x78   : > { %v522_v49 = vld [vmem:[#allocation7 + $0x180] sm:$0xff]  ;;  %v908_v52 = vpack.c.bf16 %v300_v46, %v296_v45  ;;  %v910_v53 = vpack.c.bf16 %v491_v48, %v490_v47  ;;  %v475_v55 = vld [vmem:[#allocation7 + $0x8] sm:$0xff]  ;;  %v492_v59 = vld [vmem:[#allocation7 + $0x90] sm:$0xff] }
  0x79   : > { %889 = vmatpush1.bf16.msra.mxu0 %v888_v35  ;;  %v474_v54 = vld [vmem:[#allocation7] sm:$0xff]  ;;  %v942_v57 = vpack.c.bf16 %v523_v51, %v522_v49  ;;  %v507_v58 = vld [vmem:[#allocation7 + $0x108] sm:$0xff]  ;;  %v493_v60 = vld [vmem:[#allocation7 + $0x98] sm:$0xff] }
  0x7a   : > { %905 = vmatpush1.bf16.msra.mxu1 %v904_v39  ;;  %891 = vmatprep.subr.bf16.mxu0 %v890_v40  ;;  %v506_v56 = vld [vmem:[#allocation7 + $0x100] sm:$0xff]  ;;  %v524_v61 = vld [vmem:[#allocation7 + $0x190] sm:$0xff]  ;;  %v525_v62 = vld [vmem:[#allocation7 + $0x198] sm:$0xff]  ;;  %v912_v0 = vpack.c.bf16 %v475_v55, %v474_v54  ;;  %v914_v2 = vpack.c.bf16 %v493_v60, %v492_v59 }
  0x7b   : > { %907 = vmatprep.subr.bf16.mxu1 %v906_v44  ;;  %v269_v63 = vld [vmem:[%s1410_s23] sm:$0xff]  ;;  %v944_v1 = vpack.c.bf16 %v507_v58, %v506_v56  ;;  %v946_v6 = vpack.c.bf16 %v525_v62, %v524_v61  ;;  %v494_v8 = vld [vmem:[#allocation7 + $0xa0] sm:$0xff]  ;;  %v495_v9 = vld [vmem:[#allocation7 + $0xa8] sm:$0xff] }
  0x7c   : > { %v476_v3 = vld [vmem:[#allocation7 + $0x10] sm:$0xff]  ;;  %v477_v4 = vld [vmem:[#allocation7 + $0x18] sm:$0xff]  ;;  %v526_v10 = vld [vmem:[#allocation7 + $0x1a0] sm:$0xff]  ;;  %v918_v14 = vpack.c.bf16 %v495_v9, %v494_v8 }
  0x7d   : > { %893 = vmatpush1.bf16.msra.mxu0 %v892_v50  ;;  %v508_v5 = vld [vmem:[#allocation7 + $0x110] sm:$0xff]  ;;  %v509_v7 = vld [vmem:[#allocation7 + $0x118] sm:$0xff]  ;;  %v527_v11 = vld [vmem:[#allocation7 + $0x1a8] sm:$0xff]  ;;  %v916_v12 = vpack.c.bf16 %v477_v4, %v476_v3 }
  0x7e   : > { %909 = vmatpush1.bf16.msra.mxu1 %v908_v52  ;;  %911 = vmatprep.subr.bf16.mxu0 %v910_v53  ;;  %v948_v13 = vpack.c.bf16 %v509_v7, %v508_v5  ;;  %v478_v15 = vld [vmem:[#allocation7 + $0x20] sm:$0xff]  ;;  %v479_v16 = vld [vmem:[#allocation7 + $0x28] sm:$0xff]  ;;  %v950_v18 = vpack.c.bf16 %v527_v11, %v526_v10  ;;  %v496_v20 = vld [vmem:[#allocation7 + $0xb0] sm:$0xff] }
  0x7f   : > { %943 = vmatprep.subr.bf16.mxu1 %v942_v57  ;;  %v510_v17 = vld [vmem:[#allocation7 + $0x120] sm:$0xff]  ;;  %v511_v19 = vld [vmem:[#allocation7 + $0x128] sm:$0xff]  ;;  %v497_v21 = vld [vmem:[#allocation7 + $0xb8] sm:$0xff]  ;;  %v920_v24 = vpack.c.bf16 %v479_v16, %v478_v15 }
  0x80   : > { %801 = vmatmul.mubr.msk.f32.vlgmr.msra.gmra.mrb[0].mxu0 %vm324_vm0, %v269_v63  ;;  %v528_v22 = vld [vmem:[#allocation7 + $0x1b0] sm:$0xff]  ;;  %v529_v23 = vld [vmem:[#allocation7 + $0x1b8] sm:$0xff]  ;;  %v952_v25 = vpack.c.bf16 %v511_v19, %v510_v17  ;;  %v922_v26 = vpack.c.bf16 %v497_v21, %v496_v20  ;;  %v498_v32 = vld [vmem:[#allocation7 + $0xc0] sm:$0xff] }
  0x81   : > { %802 = vmatmul.mubr.msk.f32.vlgmr.msra.gmra.mrb[0].mxu1 %vm324_vm0, %v269_v63  ;;  %913 = vmatpush3.bf16.msra.mxu0 %v912_v0  ;;  %v480_v27 = vld [vmem:[#allocation7 + $0x30] sm:$0xff]  ;;  %v481_v28 = vld [vmem:[#allocation7 + $0x38] sm:$0xff]  ;;  %v954_v30 = vpack.c.bf16 %v529_v23, %v528_v22  ;;  %v499_v33 = vld [vmem:[#allocation7 + $0xc8] sm:$0xff] }
  0x82   : > { %945 = vmatpush3.bf16.msra.mxu1 %v944_v1  ;;  %915 = vmatprep.subr.bf16.mxu0 %v914_v2  ;;  %v512_v29 = vld [vmem:[#allocation7 + $0x130] sm:$0xff]  ;;  %v513_v31 = vld [vmem:[#allocation7 + $0x138] sm:$0xff]  ;;  %v530_v34 = vld [vmem:[#allocation7 + $0x1c0] sm:$0xff]  ;;  %v924_v36 = vpack.c.bf16 %v481_v28, %v480_v27  ;;  %v926_v38 = vpack.c.bf16 %v499_v33, %v498_v32 }
  0x83   : > { %947 = vmatprep.subr.bf16.mxu1 %v946_v6  ;;  %v531_v35 = vld [vmem:[#allocation7 + $0x1c8] sm:$0xff]  ;;  %v956_v37 = vpack.c.bf16 %v513_v31, %v512_v29  ;;  %v482_v39 = vld [vmem:[#allocation7 + $0x40] sm:$0xff]  ;;  %v500_v44 = vld [vmem:[#allocation7 + $0xd0] sm:$0xff] }
  0x84   : > { %v483_v40 = vld [vmem:[#allocation7 + $0x48] sm:$0xff]  ;;  %v514_v41 = vld [vmem:[#allocation7 + $0x140] sm:$0xff]  ;;  %v958_v42 = vpack.c.bf16 %v531_v35, %v530_v34  ;;  %v501_v45 = vld [vmem:[#allocation7 + $0xd8] sm:$0xff] }
  0x85   : > { %917 = vmatpush3.bf16.msra.mxu0 %v916_v12  ;;  %v515_v43 = vld [vmem:[#allocation7 + $0x148] sm:$0xff]  ;;  %v532_v46 = vld [vmem:[#allocation7 + $0x1d0] sm:$0xff]  ;;  %v533_v47 = vld [vmem:[#allocation7 + $0x1d8] sm:$0xff]  ;;  %v928_v48 = vpack.c.bf16 %v483_v40, %v482_v39  ;;  %v930_v50 = vpack.c.bf16 %v501_v45, %v500_v44 }
  0x86   : > { %949 = vmatpush3.bf16.msra.mxu1 %v948_v13  ;;  %919 = vmatprep.subr.bf16.mxu0 %v918_v14  ;;  %v960_v49 = vpack.c.bf16 %v515_v43, %v514_v41  ;;  %v484_v51 = vld [vmem:[#allocation7 + $0x50] sm:$0xff]  ;;  %v485_v52 = vld [vmem:[#allocation7 + $0x58] sm:$0xff]  ;;  %v962_v54 = vpack.c.bf16 %v533_v47, %v532_v46  ;;  %v502_v56 = vld [vmem:[#allocation7 + $0xe0] sm:$0xff] }
  0x87   : > { %951 = vmatprep.subr.bf16.mxu1 %v950_v18  ;;  %v516_v53 = vld [vmem:[#allocation7 + $0x150] sm:$0xff]  ;;  %v517_v55 = vld [vmem:[#allocation7 + $0x158] sm:$0xff]  ;;  %v503_v57 = vld [vmem:[#allocation7 + $0xe8] sm:$0xff]  ;;  %v932_v60 = vpack.c.bf16 %v485_v52, %v484_v51  ;;  %v304_v18 = vlaneseq }
  0x88   : > { %v534_v58 = vld [vmem:[#allocation7 + $0x1e0] sm:$0xff]  ;;  %v535_v59 = vld [vmem:[#allocation7 + $0x1e8] sm:$0xff]  ;;  %v964_v61 = vpack.c.bf16 %v517_v55, %v516_v53  ;;  %v934_v62 = vpack.c.bf16 %v503_v57, %v502_v56  ;;  %v504_v6 = vld [vmem:[#allocation7 + $0xf0] sm:$0xff] }
  0x89   : > { %921 = vmatpush3.bf16.msra.mxu0 %v920_v24  ;;  %v966_v63 = vpack.c.bf16 %v535_v59, %v534_v58  ;;  %v486_v0 = vld [vmem:[#allocation7 + $0x60] sm:$0xff]  ;;  %v487_v1 = vld [vmem:[#allocation7 + $0x68] sm:$0xff]  ;;  %v505_v7 = vld [vmem:[#allocation7 + $0xf8] sm:$0xff]  ;;  %v305_v19 = vshrl.u32 %v304_v18, 7 }
  0x8a   : > { %953 = vmatpush3.bf16.msra.mxu1 %v952_v25  ;;  %923 = vmatprep.subr.bf16.mxu0 %v922_v26  ;;  %v518_v2 = vld [vmem:[#allocation7 + $0x160] sm:$0xff]  ;;  %v936_v3 = vpack.c.bf16 %v487_v1, %v486_v0  ;;  %v519_v4 = vld [vmem:[#allocation7 + $0x168] sm:$0xff]  ;;  %v536_v8 = vld [vmem:[#allocation7 + $0x1f0] sm:$0xff]  ;;  %v938_v9 = vpack.c.bf16 %v505_v7, %v504_v6 }
  0x8b   : > { %955 = vmatprep.subr.bf16.mxu1 %v954_v30  ;;  %v968_v5 = vpack.c.bf16 %v519_v4, %v518_v2  ;;  %v537_v10 = vld [vmem:[#allocation7 + $0x1f8] sm:$0xff]  ;;  %v488_v11 = vld [vmem:[#allocation7 + $0x70] sm:$0xff]  ;;  %v306_v20 = vsub.s32 0, %v305_v19  ;;  %v314_v22 = vsub.s32 2, %v305_v19  ;;  %v310_v23 = vsub.s32 1, %v305_v19 }
  0x8c   : > { %v489_v12 = vld [vmem:[#allocation7 + $0x78] sm:$0xff]  ;;  %v970_v13 = vpack.c.bf16 %v537_v10, %v536_v8  ;;  %v520_v15 = vld [vmem:[#allocation7 + $0x170] sm:$0xff]  ;;  %v318_v24 = vsub.s32 3, %v305_v19 }
  0x8d   : > { %925 = vmatpush3.bf16.msra.mxu0 %v924_v36  ;;  %v940_v14 = vpack.c.bf16 %v489_v12, %v488_v11  ;;  %v521_v16 = vld [vmem:[#allocation7 + $0x178] sm:$0xff]  ;;  %v302_v21 = vld [vmem:[%s1480_s2] sm:$0xf] }
  0x8e   : > { %957 = vmatpush3.bf16.msra.mxu1 %v956_v37  ;;  %927 = vmatprep.subr.bf16.mxu0 %v926_v38  ;;  %v972_v17 = vpack.c.bf16 %v521_v16, %v520_v15  ;;  %v307_v25 = vrot.slane %v302_v21, %v306_v20  ;;  %v315_v26 = vrot.slane %v302_v21, %v314_v22  ;;  %v803_v43 = vld [vmem:[%s1482_s4] ss:$0 sm:$0xff] }
  0x8f   : > { %959 = vmatprep.subr.bf16.mxu1 %v958_v42  ;;  %v311_v27 = vrot.slane %v302_v21, %v310_v23  ;;  %v319_v28 = vrot.slane %v302_v21, %v318_v24 }
  0x91   : > { %929 = vmatpush3.bf16.msra.mxu0 %v928_v48 }
  0x92   : > { %961 = vmatpush3.bf16.msra.mxu1 %v960_v49  ;;  %931 = vmatprep.subr.bf16.mxu0 %v930_v50 }
  0x93   : > { %963 = vmatprep.subr.bf16.mxu1 %v962_v54 }
  0x95   : > { %933 = vmatpush3.bf16.msra.mxu0 %v932_v60 }
  0x96   : > { %965 = vmatpush3.bf16.msra.mxu1 %v964_v61  ;;  %935 = vmatprep.subr.bf16.mxu0 %v934_v62 }
  0x97   : > { %967 = vmatprep.subr.bf16.mxu1 %v966_v63 }
  0x99   : > { %937 = vmatpush3.bf16.msra.mxu0 %v936_v3 }
  0x9a   : > { %969 = vmatpush3.bf16.msra.mxu1 %v968_v5  ;;  %939 = vmatprep.subr.bf16.mxu0 %v938_v9 }
  0x9b   : > { %971 = vmatprep.subr.bf16.mxu1 %v970_v13 }
  0x9d   : > { %941 = vmatpush3.bf16.msra.mxu0 %v940_v14 }
  0x9e   : > { %973 = vmatpush3.bf16.msra.mxu1 %v972_v17 }
 0x153   : > { %v394_v29 = vpop.f32.mrb[0].mxu0 }
 0x154   : > { %v395_v30 = vadd.f32 %v394_v29, %v307_v25  ;;  %v465_v31 = vpop.f32.mrb[0].mxu1  ;;  %v396_v32 = vpop.f32.mrb[1].mxu0 }
 0x155   : > { %v466_v33 = vadd.f32 %v465_v31, %v315_v26  ;;  %v397_v34 = vadd.f32 %v396_v32, %v311_v27  ;;  %v467_v35 = vpop.f32.mrb[1].mxu1 }
 0x156   : > { %v468_v36 = vadd.f32 %v467_v35, %v319_v28  ;;  %v470_v39 = vmax.f32 %v395_v30, 0.0 }
 0x157   : > { %v472_v37 = vmax.f32 %v466_v33, 0.0  ;;  %v471_v38 = vmax.f32 %v397_v34, 0.0 }
 0x158   : > { %v473_v40 = vmax.f32 %v468_v36, 0.0 }
 0x159   : > { %609 = vmatprep.mubr.f32.mxu0 %v471_v38 }
 0x15a   : > { %679 = vmatprep.mubr.f32.mxu1 %v473_v40  ;;  %610 = vmatmul.mubr.f32.vlgmr.msra.gmra.mrb[2].mxu0 %v470_v39 }
 0x15b   : > { %680 = vmatmul.mubr.f32.vlgmr.msra.gmra.mrb[2].mxu1 %v472_v37 }
 0x22d   : > { %v840_v41 = vpop.f32.mrb[2].mxu0 }
 0x22e   : > { %v875_v42 = vpop.f32.mrb[2].mxu1  ;;  %v841_v44 = vpop.f32.mrb[3].mxu0 }
 0x22f   : > { %v842_v45 = vadd.f32 %v841_v44, %v840_v41  ;;  %v876_v46 = vpop.f32.mrb[3].mxu1 }
 0x230   : > { %v877_v47 = vadd.f32 %v876_v46, %v875_v42 }
 0x231   : > { %v612_v48 = vadd.f32 %v842_v45, %v803_v43 }
 0x233   : > { %v682_v49 = vadd.f32 %v877_v47, %v612_v48 }
 0x235   : > { %685 = vst [vmem:[%s268_s13] sm:$0xff] %v682_v49 }
 0x236   : > { %1145 = shalt.err (!%p1142_p7)
}
 0x237   : > { %s1146_s14 = scalar_lea.hbm %s1435_s8, 128  ;;  %s1150_s26 = scalar_lea.hbm %s1483_s5, 512 }
 0x238   : > { %p1147_p9 = scmp.ne.s32.totalorder %s1435_s8, %s1146_s14  ;;  %p1151_p0 = scmp.lt.u32.totalorder %s1435_s8, %s1483_s5 }
 0x239   : > { %p1152_p10 = scmp.lt.u32.totalorder %s1150_s26, %s1146_s14  ;;  %p1154_p1 = scmp.lt.u32.totalorder %s1146_s14, %s1435_s8 }
 0x23a   : > { %p1148_p12 = pnand %p1147_p9, %p1358_p6 }
 0x23b   : > { %p1153_p11 = por %p1152_p10, %p1151_p0 }
 0x23c   : > { %p1149_p5 = pneg %p1148_p12 }
 0x23d   : > { %p1155_p2 = por %p1154_p1, %p1153_p11 }
 0x23f   : > { %p1156_p4 = pnand %p1155_p2, %p1149_p5 }
 0x241   : > { %1159 = shalt.err (!%p1156_p4)
}
 0x242   : > { %984 = dma.vmem_to_hbm [thread:$0]  (%p1358_p6), %s1437_s7, 128, %s1435_s8, %s687_s9  }
 0x243 PF: > { %p1006_p8 = scmp.ge.s32.totalorder %s1202_s21, 2  ;;  %s712_s12 = sand.u32 1, %s1190_s18  }
 0x244   : > { %p1498_p13 = scmp.ne.s32.totalorder %s1488_s25, 0  ;;  %s713_s13 = scalar_lea.sflag [#allocation4], %s712_s12 }
 0x246   : > { %p998_p3 = pnand %p1006_p8, %p1498_p13 }
 0x248   : > { %1185 = dma.done.wait (!%p998_p3), %s713_s13, 128  }
 0x249   : > { %1187 = vsyncadd (!%p998_p3), %s713_s13, 4294967168  ;;  %p19_p7 = scmp.ge.s32.totalorder %s1345_s16, 6   ;;  %s1499_s18 = smov %s1194_s19 }
 0x24a   : > { %s1500_s19 = smov %s1198_s20  ;;  %s1501_s20 = smov %s1354_s27 }
 0x24b   : > { %s1502_s21 = smov %s1345_s16  ;;  %21 = sbr.rel (!%p19_p7) target bundleno = 6 (0x6), region = 93 }
 0x252   :  { %718 = vsyncpa [#allocation3], 1 }
 0x253   :  { %720 = vsyncpa [#allocation3 + $0x1], 1 }
 0x254   :  { %721 = vsyncpa [#allocation6], 1 }
 0x255   :  { %722 = vsyncpa [#allocation4], 1 }
 0x256   :  { %724 = vsyncpa [#allocation4 + $0x1], 1 }

</bundles_post_ra>
